<compile_context>
chip_gen: v7x
topology: tpu7x:2x2x1
jax: 0.10.0
libtpu: 0.0.40
codegen_flags: <defaults>
</compile_context>

<pallas_src>
import functools

import jax
import jax.numpy as jnp
from jax.experimental import pallas as pl
from jax.experimental.pallas import tpu as pltpu

LN_EPS = 1e-5


def residual_block_kernel(x_ref, w1_ref, b1_ref, w2_ref, b2_ref, o_ref):
    # ---- LayerNorm (biased variance, eps=1e-5); affine folded into W1/b1 ----
    x = x_ref[...].astype(jnp.float32)
    mean = jnp.mean(x, axis=-1, keepdims=True)
    xc = x - mean
    var = jnp.mean(xc * xc, axis=-1, keepdims=True)
    xn = xc * jax.lax.rsqrt(var + LN_EPS)

    # ---- Linear1 + ReLU (bf16 operands, f32 accumulation on the MXU) ----
    h = jnp.dot(xn.astype(jnp.bfloat16), w1_ref[...],
                preferred_element_type=jnp.float32)
    h = jnp.maximum(h + b1_ref[...], 0.0)
    # TODO(synk): Dropout(p=0.3) is identity (eval mode); training mode would
    # need a pltpu.prng_seed / pltpu.prng_random_bits mask path.

    # ---- Linear2 + ReLU ----
    h = jnp.dot(h.astype(jnp.bfloat16), w2_ref[...],
                preferred_element_type=jnp.float32)
    h = jnp.maximum(h + b2_ref[...], 0.0)
    # Dropout(p=0.3): identity in eval mode.

    # ---- Residual add: re-read the input tile (still resident in its pipeline
    # buffer) instead of keeping an f32 copy live across both matmuls.
    o_ref[...] = (x_ref[...].astype(jnp.float32) + h).astype(o_ref.dtype)


def _round_down8(n):
    return max(8, (n // 8) * 8)


def _pick_block_rows(batch, max_rows):
    """Row tile that is a multiple of 8, divides the batch when possible (no
    wrapper pad / slice copies) and leaves >=4 grid steps so both v7x
    TensorCores get >=2 pipelined iterations each."""
    if batch <= 0:
        return 1
    if batch % 8 != 0:
        # Ragged batch: a single full-batch block is legal (block dim == array
        # dim) and avoids padding; otherwise pad to 8-row multiples.
        return batch if batch <= max_rows else _round_down8(max_rows)
    cap = min(max_rows, batch)
    if batch >= 32:
        cap = min(cap, batch // 4)       # >= 4 grid steps when batch allows
    cap = _round_down8(cap)
    for cand in range(cap, 7, -8):       # largest 8-multiple dividing batch
        if batch % cand == 0:
            return cand
    return 8


def _vmem_limit_bytes():
    """Physical per-core VMEM minus ~25% headroom (v5e/v6e 128MiB, v7x 64MiB)."""
    try:
        cap = int(pltpu.get_tpu_info().vmem_capacity_bytes)
    except Exception:
        cap = 64 * 1024 * 1024           # conservative (v7x-sized) fallback
    return int(cap * 3 // 4)


def _rows_that_fit(d, vmem_limit, block_rows, weight_buffers):
    """Clamp the row tile so (weights + double-buffered x/out tiles + f32/bf16
    temporaries) stay inside the requested VMEM limit."""
    weight_bytes = weight_buffers * 2 * d * d * 2      # two bf16 DxD weights
    budget = int(vmem_limit * 0.8) - weight_bytes
    per_row = 32 * d    # x/out double-buffered (16*d) + f32/bf16 temps (~16*d)
    if budget <= per_row * 8:
        # TODO(synk): weights don't comfortably fit (large D on v7x) -> a
        # streamed-weight tiled variant (extra 'arbitrary' grid axis over N/K
        # with an f32 accumulator) is needed; fall back to minimal row tiles.
        return 8
    return max(8, min(block_rows, ((budget // per_row) // 8) * 8))


@functools.partial(
    jax.jit, static_argnames=("block_rows", "single_buffer_weights", "vmem_limit"))
def _residual_block_impl(x, gamma, beta, w1, b1, w2, b2, *,
                         block_rows, single_buffer_weights, vmem_limit):
    B, D = x.shape
    assert D % 128 == 0, "pad the feature dim to a multiple of 128 outside"
    # TODO(synk): masked-lane path for D not a multiple of 128.

    gamma = gamma.reshape(1, D).astype(jnp.float32)
    beta = beta.reshape(1, D).astype(jnp.float32)
    b1 = b1.reshape(1, D).astype(jnp.float32)
    b2 = b2.reshape(1, D).astype(jnp.float32)
    w1 = w1.astype(jnp.float32)
    w2 = w2.astype(jnp.float32)

    # Fold the LayerNorm affine into Linear1:
    #   (xn*gamma + beta) @ W1 + b1 == xn @ (gamma[:,None]*W1) + (beta @ W1 + b1)
    w1_eff = (gamma.reshape(D, 1) * w1).astype(jnp.bfloat16)
    b1_eff = b1 + jnp.dot(beta, w1, precision=jax.lax.Precision.HIGHEST)
    w2_bf = w2.astype(jnp.bfloat16)

    weight_buffers = 1 if single_buffer_weights else 2
    max_rows = _rows_that_fit(D, vmem_limit, block_rows, weight_buffers)
    br = _pick_block_rows(B, max_rows)
    pad = (-B) % br
    xp = jnp.pad(x, ((0, pad), (0, 0))) if pad else x
    Bp = B + pad
    grid = (Bp // br,)

    row_spec = pl.BlockSpec((br, D), lambda i: (i, 0))
    if single_buffer_weights:
        # Constant-index weight/bias blocks never change across the grid:
        # single-buffer them to halve their resident VMEM (no perf cost).
        mat_spec = pl.BlockSpec((D, D), lambda i: (0, 0),
                                pipeline_mode=pl.Buffered(1))
        vec_spec = pl.BlockSpec((1, D), lambda i: (0, 0),
                                pipeline_mode=pl.Buffered(1))
    else:
        mat_spec = pl.BlockSpec((D, D), lambda i: (0, 0))
        vec_spec = pl.BlockSpec((1, D), lambda i: (0, 0))

    cost = pl.CostEstimate(
        flops=4 * Bp * D * D + 10 * Bp * D,          # 2 matmuls + LN/ReLU/residual
        transcendentals=Bp,                           # rsqrt per row
        bytes_accessed=2 * Bp * D * 4                 # x in + out
                       + 2 * D * D * 2                # bf16 weights
                       + 2 * D * 4,                   # biases
    )

    out = pl.pallas_call(
        residual_block_kernel,
        out_shape=jax.ShapeDtypeStruct((Bp, D), x.dtype),
        grid_spec=pltpu.PrefetchScalarGridSpec(
            num_scalar_prefetch=0,
            grid=grid,
            in_specs=[row_spec,             # x tile
                      mat_spec, vec_spec,   # W1' (in, out), b1'
                      mat_spec, vec_spec],  # W2  (in, out), b2
            out_specs=row_spec,
        ),
        compiler_params=pltpu.CompilerParams(
            dimension_semantics=("parallel",),
            vmem_limit_bytes=vmem_limit,
        ),
        cost_estimate=cost,
    )(xp, w1_eff, b1_eff, w2_bf, b2)

    return out[:B] if pad else out


def residual_block(x, gamma, beta, w1, b1, w2, b2, *, block_rows=512):
    """x: [B, D].  gamma/beta/b1/b2: [D] (or [1, D]).  w1/w2: [D, D] stored
    (in, out), i.e. the transpose of PyTorch's nn.Linear weight."""
    vmem_limit = int(_vmem_limit_bytes())
    try:
        return _residual_block_impl(x, gamma, beta, w1, b1, w2, b2,
                                    block_rows=int(block_rows),
                                    single_buffer_weights=True,
                                    vmem_limit=vmem_limit)
    except Exception:
        # pipeline_mode=pl.Buffered(1) not supported by this jax build:
        # fall back to default double-buffered weight blocks (still correct).
        return _residual_block_impl(x, gamma, beta, w1, b1, w2, b2,
                                    block_rows=int(block_rows),
                                    single_buffer_weights=False,
                                    vmem_limit=vmem_limit)


def reference_fp32(x, gamma, beta, w1, b1, w2, b2):
    """Full-f32 reference matching the PyTorch module (eval mode)."""
    xf = x.astype(jnp.float32)
    mean = jnp.mean(xf, axis=-1, keepdims=True)
    var = jnp.mean((xf - mean) ** 2, axis=-1, keepdims=True)
    xn = (xf - mean) * jax.lax.rsqrt(var + LN_EPS)
    xn = xn * gamma.reshape(1, -1) + beta.reshape(1, -1)
    h = jnp.dot(xn, w1, precision=jax.lax.Precision.HIGHEST) + b1.reshape(1, -1)
    h = jnp.maximum(h, 0.0)
    h = jnp.dot(h, w2, precision=jax.lax.Precision.HIGHEST) + b2.reshape(1, -1)
    h = jnp.maximum(h, 0.0)
    return (xf + h).astype(x.dtype)


if __name__ == "__main__":
    # Small demo shapes: D=128 maps exactly to the 128-lane axis; B=64 gives a
    # 4-step row grid (>=2 iterations per TensorCore on v7x) with no padding.
    B, D = 64, 128
    key = jax.random.PRNGKey(0)
    kx, kw1, kb1, kw2, kb2, kg, kbt = jax.random.split(key, 7)

    x = jax.random.normal(kx, (B, D), dtype=jnp.float32)

    # Non-trivial LayerNorm affine so the folded-weight path is exercised.
    gamma = 1.0 + 0.1 * jax.random.normal(kg, (D,), dtype=jnp.float32)
    beta = 0.1 * jax.random.normal(kbt, (D,), dtype=jnp.float32)

    # Linear weights: PyTorch weight is (out, in); stored pre-transposed
    # (in, out) so the kernel computes y = x @ W + b.
    bound = 1.0 / (D ** 0.5)
    w1 = jax.random.uniform(kw1, (D, D), jnp.float32, -bound, bound)
    b1 = jax.random.uniform(kb1, (D,), jnp.float32, -bound, bound)
    w2 = jax.random.uniform(kw2, (D, D), jnp.float32, -bound, bound)
    b2 = jax.random.uniform(kb2, (D,), jnp.float32, -bound, bound)

    out = residual_block(x, gamma, beta, w1, b1, w2, b2)
    out = jax.block_until_ready(out)

    ref = reference_fp32(x, gamma, beta, w1, b1, w2, b2)
    assert out.shape == (B, D)
    max_err = float(jnp.max(jnp.abs(out - ref)))
    # bf16 matmul operands vs. full-f32 torch Linear: small D keeps the error
    # well inside this bound.
    assert max_err < 5e-2, max_err

    print("KERNEL_OK")
</pallas_src>

<mosaic_0001>
module attributes {stable_mosaic.version = 11 : i64} {
  func.func @residual_block_kernel(%arg0: i32, %arg1: memref<16x128xf32, #tpu.memory_space<vmem>>, %arg2: memref<128x128xbf16, #tpu.memory_space<vmem>>, %arg3: memref<1x128xf32, #tpu.memory_space<vmem>>, %arg4: memref<128x128xbf16, #tpu.memory_space<vmem>>, %arg5: memref<1x128xf32, #tpu.memory_space<vmem>>, %arg6: memref<16x128xf32, #tpu.memory_space<vmem>>) attributes {dimension_semantics = [#tpu.dimension_semantics<parallel>], iteration_bounds = array<i64: 4>, scalar_prefetch = 0 : i64, scratch_operands = 0 : i64, tpu.core_type = #tpu.core_type<tc>, window_params = [{transform_indices = @transform_0, window_bounds = array<i64: 16, 128>}, {pipeline_mode = #tpu.pipeline_mode<synchronous>, transform_indices = @transform_1, window_bounds = array<i64: 128, 128>}, {pipeline_mode = #tpu.pipeline_mode<synchronous>, transform_indices = @transform_2, window_bounds = array<i64: 1, 128>}, {pipeline_mode = #tpu.pipeline_mode<synchronous>, transform_indices = @transform_3, window_bounds = array<i64: 128, 128>}, {pipeline_mode = #tpu.pipeline_mode<synchronous>, transform_indices = @transform_4, window_bounds = array<i64: 1, 128>}, {transform_indices = @transform_5, window_bounds = array<i64: 16, 128>}]} {
    %c0 = arith.constant 0 : index
    %c0_0 = arith.constant 0 : index
    %0 = vector.load %arg1[%c0, %c0_0] : memref<16x128xf32, #tpu.memory_space<vmem>>, vector<16x128xf32>
    %cst = arith.constant dense<0.000000e+00> : vector<16xf32>
    %1 = vector.multi_reduction <add>, %0, %cst [1] : vector<16x128xf32> to vector<16xf32>
    %2 = vector.shape_cast %1 : vector<16xf32> to vector<16x1xf32>
    %cst_1 = arith.constant 1.280000e+02 : f32
    %3 = vector.broadcast %cst_1 : f32 to vector<16x1xf32>
    %4 = arith.divf %2, %3 : vector<16x1xf32>
    %5 = vector.broadcast %4 : vector<16x1xf32> to vector<16x128xf32>
    %6 = arith.subf %0, %5 : vector<16x128xf32>
    %7 = arith.mulf %6, %6 : vector<16x128xf32>
    %cst_2 = arith.constant dense<0.000000e+00> : vector<16xf32>
    %8 = vector.multi_reduction <add>, %7, %cst_2 [1] : vector<16x128xf32> to vector<16xf32>
    %9 = vector.shape_cast %8 : vector<16xf32> to vector<16x1xf32>
    %cst_3 = arith.constant 1.280000e+02 : f32
    %10 = vector.broadcast %cst_3 : f32 to vector<16x1xf32>
    %11 = arith.divf %9, %10 : vector<16x1xf32>
    %cst_4 = arith.constant 9.99999974E-6 : f32
    %12 = vector.broadcast %cst_4 : f32 to vector<16x1xf32>
    %13 = arith.addf %11, %12 : vector<16x1xf32>
    %14 = math.rsqrt %13 : vector<16x1xf32>
    %15 = vector.broadcast %14 : vector<16x1xf32> to vector<16x128xf32>
    %16 = arith.mulf %6, %15 : vector<16x128xf32>
    %17 = arith.truncf %16 : vector<16x128xf32> to vector<16x128xbf16>
    %c0_5 = arith.constant 0 : index
    %c0_6 = arith.constant 0 : index
    %18 = vector.load %arg2[%c0_5, %c0_6] : memref<128x128xbf16, #tpu.memory_space<vmem>>, vector<128x128xbf16>
    %cst_7 = arith.constant dense<0.000000e+00> : vector<16x128xf32>
    %19 = tpu.matmul %17, %18, %cst_7 {dimension_numbers = #tpu.dot_dimension_numbers<[1], [0], [0], [1], [0, 0, 1, 1], [], []>} : vector<16x128xbf16>, vector<128x128xbf16>, vector<16x128xf32> -> vector<16x128xf32>
    %c0_8 = arith.constant 0 : index
    %c0_9 = arith.constant 0 : index
    %20 = vector.load %arg3[%c0_8, %c0_9] : memref<1x128xf32, #tpu.memory_space<vmem>>, vector<1x128xf32>
    %21 = vector.broadcast %20 : vector<1x128xf32> to vector<16x128xf32>
    %22 = arith.addf %19, %21 : vector<16x128xf32>
    %cst_10 = arith.constant 0.000000e+00 : f32
    %23 = vector.broadcast %cst_10 : f32 to vector<16x128xf32>
    %24 = arith.maximumf %22, %23 : vector<16x128xf32>
    %25 = arith.truncf %24 : vector<16x128xf32> to vector<16x128xbf16>
    %c0_11 = arith.constant 0 : index
    %c0_12 = arith.constant 0 : index
    %26 = vector.load %arg4[%c0_11, %c0_12] : memref<128x128xbf16, #tpu.memory_space<vmem>>, vector<128x128xbf16>
    %cst_13 = arith.constant dense<0.000000e+00> : vector<16x128xf32>
    %27 = tpu.matmul %25, %26, %cst_13 {dimension_numbers = #tpu.dot_dimension_numbers<[1], [0], [0], [1], [0, 0, 1, 1], [], []>} : vector<16x128xbf16>, vector<128x128xbf16>, vector<16x128xf32> -> vector<16x128xf32>
    %c0_14 = arith.constant 0 : index
    %c0_15 = arith.constant 0 : index
    %28 = vector.load %arg5[%c0_14, %c0_15] : memref<1x128xf32, #tpu.memory_space<vmem>>, vector<1x128xf32>
    %29 = vector.broadcast %28 : vector<1x128xf32> to vector<16x128xf32>
    %30 = arith.addf %27, %29 : vector<16x128xf32>
    %cst_16 = arith.constant 0.000000e+00 : f32
    %31 = vector.broadcast %cst_16 : f32 to vector<16x128xf32>
    %32 = arith.maximumf %30, %31 : vector<16x128xf32>
    %c0_17 = arith.constant 0 : index
    %c0_18 = arith.constant 0 : index
    %33 = vector.load %arg1[%c0_17, %c0_18] : memref<16x128xf32, #tpu.memory_space<vmem>>, vector<16x128xf32>
    %34 = arith.addf %33, %32 : vector<16x128xf32>
    %c0_19 = arith.constant 0 : index
    %c0_20 = arith.constant 0 : index
    %35 = vector.load %arg6[%c0_19, %c0_20] : memref<16x128xf32, #tpu.memory_space<vmem>>, vector<16x128xf32>
    tpu.vector_store %arg6[%c0_19, %c0_20], %34 {strides = array<i32>} : memref<16x128xf32, #tpu.memory_space<vmem>>, vector<16x128xf32>,
    return
  }
  func.func @transform_0(%arg0: i32) -> (i32, i32) {
    %c0_i32 = arith.constant 0 : i32
    %c0_i32_0 = arith.constant 0 : i32
    return %arg0, %c0_i32 : i32, i32
  }
  func.func @transform_1(%arg0: i32) -> (i32, i32) {
    %c0_i32 = arith.constant 0 : i32
    %c0_i32_0 = arith.constant 0 : i32
    %c0_i32_1 = arith.constant 0 : i32
    return %c0_i32, %c0_i32_0 : i32, i32
  }
  func.func @transform_2(%arg0: i32) -> (i32, i32) {
    %c0_i32 = arith.constant 0 : i32
    %c0_i32_0 = arith.constant 0 : i32
    %c0_i32_1 = arith.constant 0 : i32
    return %c0_i32, %c0_i32_0 : i32, i32
  }
  func.func @transform_3(%arg0: i32) -> (i32, i32) {
    %c0_i32 = arith.constant 0 : i32
    %c0_i32_0 = arith.constant 0 : i32
    %c0_i32_1 = arith.constant 0 : i32
    return %c0_i32, %c0_i32_0 : i32, i32
  }
  func.func @transform_4(%arg0: i32) -> (i32, i32) {
    %c0_i32 = arith.constant 0 : i32
    %c0_i32_0 = arith.constant 0 : i32
    %c0_i32_1 = arith.constant 0 : i32
    return %c0_i32, %c0_i32_0 : i32, i32
  }
  func.func @transform_5(%arg0: i32) -> (i32, i32) {
    %c0_i32 = arith.constant 0 : i32
    %c0_i32_0 = arith.constant 0 : i32
    return %arg0, %c0_i32 : i32, i32
  }
}

module attributes {stable_mosaic.version = 11 : i64} {
  func.func @residual_block_kernel(%arg0: i32, %arg1: memref<16x128xf32, #tpu.memory_space<vmem>>, %arg2: memref<128x128xbf16, #tpu.memory_space<vmem>>, %arg3: memref<1x128xf32, #tpu.memory_space<vmem>>, %arg4: memref<128x128xbf16, #tpu.memory_space<vmem>>, %arg5: memref<1x128xf32, #tpu.memory_space<vmem>>, %arg6: memref<16x128xf32, #tpu.memory_space<vmem>>) attributes {dimension_semantics = [#tpu.dimension_semantics<parallel>], iteration_bounds = array<i64: 4>, scalar_prefetch = 0 : i64, scratch_operands = 0 : i64, tpu.core_type = #tpu.core_type<tc>, window_params = [{transform_indices = @transform_0, window_bounds = array<i64: 16, 128>}, {pipeline_mode = #tpu.pipeline_mode<synchronous>, transform_indices = @transform_1, window_bounds = array<i64: 128, 128>}, {pipeline_mode = #tpu.pipeline_mode<synchronous>, transform_indices = @transform_2, window_bounds = array<i64: 1, 128>}, {pipeline_mode = #tpu.pipeline_mode<synchronous>, transform_indices = @transform_3, window_bounds = array<i64: 128, 128>}, {pipeline_mode = #tpu.pipeline_mode<synchronous>, transform_indices = @transform_4, window_bounds = array<i64: 1, 128>}, {transform_indices = @transform_5, window_bounds = array<i64: 16, 128>}]} {
    %c0 = arith.constant 0 : index
    %c0_0 = arith.constant 0 : index
    %0 = vector.load %arg1[%c0, %c0_0] : memref<16x128xf32, #tpu.memory_space<vmem>>, vector<16x128xf32>
    %cst = arith.constant dense<0.000000e+00> : vector<16xf32>
    %1 = vector.multi_reduction <add>, %0, %cst [1] : vector<16x128xf32> to vector<16xf32>
    %2 = vector.shape_cast %1 : vector<16xf32> to vector<16x1xf32>
    %cst_1 = arith.constant 1.280000e+02 : f32
    %3 = vector.broadcast %cst_1 : f32 to vector<16x1xf32>
    %4 = arith.divf %2, %3 : vector<16x1xf32>
    %5 = vector.broadcast %4 : vector<16x1xf32> to vector<16x128xf32>
    %6 = arith.subf %0, %5 : vector<16x128xf32>
    %7 = arith.mulf %6, %6 : vector<16x128xf32>
    %cst_2 = arith.constant dense<0.000000e+00> : vector<16xf32>
    %8 = vector.multi_reduction <add>, %7, %cst_2 [1] : vector<16x128xf32> to vector<16xf32>
    %9 = vector.shape_cast %8 : vector<16xf32> to vector<16x1xf32>
    %cst_3 = arith.constant 1.280000e+02 : f32
    %10 = vector.broadcast %cst_3 : f32 to vector<16x1xf32>
    %11 = arith.divf %9, %10 : vector<16x1xf32>
    %cst_4 = arith.constant 9.99999974E-6 : f32
    %12 = vector.broadcast %cst_4 : f32 to vector<16x1xf32>
    %13 = arith.addf %11, %12 : vector<16x1xf32>
    %14 = math.rsqrt %13 : vector<16x1xf32>
    %15 = vector.broadcast %14 : vector<16x1xf32> to vector<16x128xf32>
    %16 = arith.mulf %6, %15 : vector<16x128xf32>
    %17 = arith.truncf %16 : vector<16x128xf32> to vector<16x128xbf16>
    %c0_5 = arith.constant 0 : index
    %c0_6 = arith.constant 0 : index
    %18 = vector.load %arg2[%c0_5, %c0_6] : memref<128x128xbf16, #tpu.memory_space<vmem>>, vector<128x128xbf16>
    %cst_7 = arith.constant dense<0.000000e+00> : vector<16x128xf32>
    %19 = tpu.matmul %17, %18, %cst_7 {dimension_numbers = #tpu.dot_dimension_numbers<[1], [0], [0], [1], [0, 0, 1, 1], [], []>} : vector<16x128xbf16>, vector<128x128xbf16>, vector<16x128xf32> -> vector<16x128xf32>
    %c0_8 = arith.constant 0 : index
    %c0_9 = arith.constant 0 : index
    %20 = vector.load %arg3[%c0_8, %c0_9] : memref<1x128xf32, #tpu.memory_space<vmem>>, vector<1x128xf32>
    %21 = vector.broadcast %20 : vector<1x128xf32> to vector<16x128xf32>
    %22 = arith.addf %19, %21 : vector<16x128xf32>
    %cst_10 = arith.constant 0.000000e+00 : f32
    %23 = vector.broadcast %cst_10 : f32 to vector<16x128xf32>
    %24 = arith.maximumf %22, %23 : vector<16x128xf32>
    %25 = arith.truncf %24 : vector<16x128xf32> to vector<16x128xbf16>
    %c0_11 = arith.constant 0 : index
    %c0_12 = arith.constant 0 : index
    %26 = vector.load %arg4[%c0_11, %c0_12] : memref<128x128xbf16, #tpu.memory_space<vmem>>, vector<128x128xbf16>
    %cst_13 = arith.constant dense<0.000000e+00> : vector<16x128xf32>
    %27 = tpu.matmul %25, %26, %cst_13 {dimension_numbers = #tpu.dot_dimension_numbers<[1], [0], [0], [1], [0, 0, 1, 1], [], []>} : vector<16x128xbf16>, vector<128x128xbf16>, vector<16x128xf32> -> vector<16x128xf32>
    %c0_14 = arith.constant 0 : index
    %c0_15 = arith.constant 0 : index
    %28 = vector.load %arg5[%c0_14, %c0_15] : memref<1x128xf32, #tpu.memory_space<vmem>>, vector<1x128xf32>
    %29 = vector.broadcast %28 : vector<1x128xf32> to vector<16x128xf32>
    %30 = arith.addf %27, %29 : vector<16x128xf32>
    %cst_16 = arith.constant 0.000000e+00 : f32
    %31 = vector.broadcast %cst_16 : f32 to vector<16x128xf32>
    %32 = arith.maximumf %30, %31 : vector<16x128xf32>
    %c0_17 = arith.constant 0 : index
    %c0_18 = arith.constant 0 : index
    %33 = vector.load %arg1[%c0_17, %c0_18] : memref<16x128xf32, #tpu.memory_space<vmem>>, vector<16x128xf32>
    %34 = arith.addf %33, %32 : vector<16x128xf32>
    %c0_19 = arith.constant 0 : index
    %c0_20 = arith.constant 0 : index
    %35 = vector.load %arg6[%c0_19, %c0_20] : memref<16x128xf32, #tpu.memory_space<vmem>>, vector<16x128xf32>
    tpu.vector_store %arg6[%c0_19, %c0_20], %34 {strides = array<i32>} : memref<16x128xf32, #tpu.memory_space<vmem>>, vector<16x128xf32>,
    return
  }
  func.func @transform_0(%arg0: i32) -> (i32, i32) {
    %c0_i32 = arith.constant 0 : i32
    %c0_i32_0 = arith.constant 0 : i32
    return %arg0, %c0_i32 : i32, i32
  }
  func.func @transform_1(%arg0: i32) -> (i32, i32) {
    %c0_i32 = arith.constant 0 : i32
    %c0_i32_0 = arith.constant 0 : i32
    %c0_i32_1 = arith.constant 0 : i32
    return %c0_i32, %c0_i32_0 : i32, i32
  }
  func.func @transform_2(%arg0: i32) -> (i32, i32) {
    %c0_i32 = arith.constant 0 : i32
    %c0_i32_0 = arith.constant 0 : i32
    %c0_i32_1 = arith.constant 0 : i32
    return %c0_i32, %c0_i32_0 : i32, i32
  }
  func.func @transform_3(%arg0: i32) -> (i32, i32) {
    %c0_i32 = arith.constant 0 : i32
    %c0_i32_0 = arith.constant 0 : i32
    %c0_i32_1 = arith.constant 0 : i32
    return %c0_i32, %c0_i32_0 : i32, i32
  }
  func.func @transform_4(%arg0: i32) -> (i32, i32) {
    %c0_i32 = arith.constant 0 : i32
    %c0_i32_0 = arith.constant 0 : i32
    %c0_i32_1 = arith.constant 0 : i32
    return %c0_i32, %c0_i32_0 : i32, i32
  }
  func.func @transform_5(%arg0: i32) -> (i32, i32) {
    %c0_i32 = arith.constant 0 : i32
    %c0_i32_0 = arith.constant 0 : i32
    return %arg0, %c0_i32 : i32, i32
  }
}

</mosaic_0001>

<bundles_post_ra>
// kernel: _residual_block_impl.1
= control target key start
LH: loop header
LB: loop body
LE: loop exit
PB: predicated region body
PF: predicated region fallthrough
CT: control target
= control target key end

     0   :  { %10 = vsyncpa [#allocation3], 0  ;;  %s997_s0 = inlined_call_operand.vmem [shape: f32[64,128], index: 0, kind: input, shape index: {}]   ;;  %s998_s1 = inlined_call_operand.vmem [shape: bf16[128,128], index: 1, kind: input, shape index: {}]   ;;  %s999_s2 = inlined_call_operand.vmem [shape: f32[1,128], index: 2, kind: input, shape index: {}]   ;;  %s1000_s3 = inlined_call_operand.vmem [shape: bf16[128,128], index: 3, kind: input, shape index: {}]   ;;  %s1001_s4 = inlined_call_operand.vmem [shape: f32[1,128], index: 4, kind: input, shape index: {}]   ;;  %s1002_s5 = inlined_call_operand.hbm [shape: f32[64,128], index: 5, kind: output, shape index: {}]  }
   0x1   :  { %12 = vsyncpa [#allocation3 + $0x1], 0  ;;  %s813_s18 = smov 0   ;;  %s815_s19 = smov 0  }
   0x2   :  { %s817_s20 = smov 0   ;;  %s819_s21 = smov 0  }
   0x3 LB: > { %s834_s22 = sadd.s32 4294967295, %s776_s21   ;;  %s562_s23 = sadd.s32 4294967294, %s776_s21   ;;  %s776_s21 = sphi %s819_s21, %s1008_s21   ;;  %s772_s20 = sphi %s817_s20, %s1007_s20   ;;  %s768_s19 = sphi %s815_s19, %s1006_s19   ;;  %s764_s18 = sphi %s813_s18, %s1005_s18  }
   0x4   : > { %s838_s24 = sadd.s32 1, %s776_s21   ;;  %s135_s25 = sadd.s32 1, %s772_s20 }
   0x5   : > { %s132_s26 = ssub.s32 %s776_s21, %s838_s24  ;;  %p145_p0 = scmp.ne.s32.totalorder %s772_s20, %s768_s19 }
   0x6   : > { %p133_p1 = scmp.eq.s32.totalorder %s132_s26, 0  ;;  %p146_p2 = scmp.eq.s32.totalorder %s834_s22, 3 }
   0x7   : > { %p151_p3 = scmp.ne.s32.totalorder %s768_s19, %s764_s18  ;;  %p152_p4 = scmp.eq.s32.totalorder %s562_s23, 3 }
   0x8   : > { %s849_s27 = scalar_select %p133_p1, %s772_s20, %s135_s25  }
   0x9   : > { %p851_p5 = por %p146_p2, %p145_p0  ;;  %p855_p6 = por %p152_p4, %p151_p3 }
   0xa   : > { %p565_p7 = scmp.ge.s32.totalorder %s776_s21, 1  ;;  %p191_p8 = scmp.lt.s32.totalorder %s776_s21, 5 }
   0xc   : > { %p192_p9 = pnand %p565_p7, %p191_p8 }
   0xd   : > { %s567_s30 = sshll.u32 (!%p192_p9), %s834_s22, 1  ;;  %v694_v2 = vld [vmem:[%s998_s1] sm:$0xff] (!%p192_p9)   ;;  %v778_v3 = vmov (!%p192_p9), 0.0   ;;  %v695_v4 = vld [vmem:[%s998_s1 + $0x8] sm:$0xff] (!%p192_p9)   ;;  %v696_v13 = vld [vmem:[%s998_s1 + $0x10] sm:$0xff] (!%p192_p9)   ;;  %vm779_vm0 = vmmov (!%p192_p9), 0  }
   0xe   : > { %195 = sbr.rel (%p192_p9) target bundleno = 793 (0x319), region = 40  ;;  %p220_p10 = scmp.lt.s32.totalorder (!%p192_p9), %s567_s30, 7  ;;  %611 = vmatprep.subr.bf16.mxu0 (!%p192_p9), %v778_v3  ;;  %631 = vmatprep.subr.bf16.mxu1 (!%p192_p9), %v778_v3  ;;  %v697_v14 = vld [vmem:[%s998_s1 + $0x18] sm:$0xff] (!%p192_p9)   ;;  %v698_v15 = vld [vmem:[%s998_s1 + $0x20] sm:$0xff] (!%p192_p9)   ;;  %v699_v16 = vld [vmem:[%s998_s1 + $0x28] sm:$0xff] (!%p192_p9)  }
   0xf   : > { %612 = vmatpush3.bf16.msra.mxu0 (!%p192_p9), %v694_v2  ;;  %627 = vmatprep.mubr.msk.bf16.mxu0 (!%p192_p9), %vm779_vm0, %v778_v3  ;;  %v700_v17 = vld [vmem:[%s998_s1 + $0x30] sm:$0xff] (!%p192_p9)   ;;  %v701_v18 = vld [vmem:[%s998_s1 + $0x38] sm:$0xff] (!%p192_p9)   ;;  %v702_v19 = vld [vmem:[%s1000_s3] sm:$0xff] (!%p192_p9)   ;;  %s216_s12 = sand.u32 (!%p192_p9), 1, %s768_s19   ;;  %s592_s23 = sshll.u32 (!%p192_p9), %s834_s22, 8 }
  0x10   : > { %613 = vmatprep.subr.bf16.mxu0 (!%p192_p9), %v778_v3  ;;  %647 = vmatprep.mubr.msk.bf16.mxu1 (!%p192_p9), %vm779_vm0, %v778_v3  ;;  %v703_v20 = vld [vmem:[%s1000_s3 + $0x8] sm:$0xff] (!%p192_p9)   ;;  %v704_v21 = vld [vmem:[%s1000_s3 + $0x10] sm:$0xff] (!%p192_p9)   ;;  %v705_v22 = vld [vmem:[%s1000_s3 + $0x18] sm:$0xff] (!%p192_p9)   ;;  %s566_s13 = sshll.u32 (!%p192_p9), %s216_s12, 4  ;;  %s780_s7 = smov (!%p192_p9), [#allocation2]  }
  0x11   : > { %632 = vmatpush3.bf16.msra.mxu1 (!%p192_p9), %v702_v19  ;;  %v706_v23 = vld [vmem:[%s1000_s3 + $0x20] sm:$0xff] (!%p192_p9)   ;;  %v707_v24 = vld [vmem:[%s1000_s3 + $0x28] sm:$0xff] (!%p192_p9)   ;;  %v708_v36 = vld [vmem:[%s1000_s3 + $0x30] sm:$0xff] (!%p192_p9)   ;;  %s218_s16 = scalar_lea.vmem (!%p192_p9), [#allocation2], %s566_s13  ;;  %s718_s8 = sshll.u32 (!%p192_p9), %s780_s7, 4  ;;  %s719_s8 = int_to_ptr.vmem [resolvable:$false] %s718_s8 }
  0x12   : > { %633 = vmatprep.subr.bf16.mxu1 (!%p192_p9), %v778_v3  ;;  %v709_v37 = vld [vmem:[%s1000_s3 + $0x38] sm:$0xff] (!%p192_p9)   ;;  %v569_v38 = vld [vmem:[%s999_s2] ss:$0 sm:$0xff] (!%p192_p9)  ;;  %s500_s17 = sshll.u32 (!%p192_p9), %s218_s16, 4  ;;  %s948_s17 = int_to_ptr.vmem [resolvable:$true] %s500_s17 }
  0x13   : > { %614 = vmatpush3.bf16.msra.mxu0 (!%p192_p9), %v695_v4  ;;  %v578_v48 = vld [vmem:[%s1001_s4] ss:$0 sm:$0xff] (!%p192_p9)  ;;  %s714_s22 = scalar_lea.vmem (!%p192_p9), %s948_s17, 256  ;;  %p721_p0 = scmp.lt.s32.totalorder (!%p192_p9), %s948_s17, %s719_s8 }
  0x14   : > { %615 = vmatprep.subr.bf16.mxu0 (!%p192_p9), %v778_v3  ;;  %p715_p11 = scmp.ne.s32.totalorder (!%p192_p9), %s948_s17, %s714_s22 }
  0x15   : > { %s1010_s30 = smov (!%p220_p10, %s567_s30), 7  ;;  %634 = vmatpush3.bf16.msra.mxu1 %v703_v20 }
  0x16   : > { %s568_s6 = sshll.u32 %s1010_s30, 3  ;;  %635 = vmatprep.subr.bf16.mxu1 %v778_v3  ;;  %s953_s30 = scalar_lea.hbm %s1002_s5, %s592_s23 }
  0x17   : > { %s223_s9 = scalar_lea.vmem %s997_s0, %s568_s6  ;;  %616 = vmatpush3.bf16.msra.mxu0 %v696_v13  ;;  %s956_s6 = scalar_lea.sflag [#allocation3], %s216_s12 }
  0x18   : > { %v865_v0 = vld [vmem:[%s223_s9] sm:$0xff]  ;;  %v867_v1 = vld [vmem:[%s223_s9 + $0x8] sm:$0xff]  ;;  %617 = vmatprep.subr.bf16.mxu0 %v778_v3  ;;  %p716_p12 = pnand %p715_p11, %p851_p5  ;;  %s720_s9 = scalar_lea.vmem %s719_s8, 512 }
  0x19   : > { %229 = vadd.xlane.f32.xlu0 %v865_v0  ;;  %636 = vmatpush3.bf16.msra.mxu1 %v704_v21  ;;  %p722_p1 = scmp.lt.s32.totalorder %s720_s9, %s714_s22 }
  0x1a   : > { %637 = vmatprep.subr.bf16.mxu1 %v778_v3  ;;  %p717_p13 = pneg %p716_p12 }
  0x1b   : > { %618 = vmatpush3.bf16.msra.mxu0 %v697_v14  ;;  %p723_p2 = por %p722_p1, %p721_p0 }
  0x1c   : > { %619 = vmatprep.subr.bf16.mxu0 %v778_v3 }
  0x1d   : > { %231 = vadd.xlane.f32.xlu0 %v867_v1  ;;  %638 = vmatpush3.bf16.msra.mxu1 %v705_v22  ;;  %p724_p3 = pnand %p723_p2, %p717_p13 }
  0x1e   : > { %639 = vmatprep.subr.bf16.mxu1 %v778_v3 }
  0x1f   : > { %620 = vmatpush3.bf16.msra.mxu0 %v698_v15 }
  0x20   : > { %621 = vmatprep.subr.bf16.mxu0 %v778_v3 }
  0x21   : > { %640 = vmatpush3.bf16.msra.mxu1 %v706_v23 }
  0x22   : > { %641 = vmatprep.subr.bf16.mxu1 %v778_v3 }
  0x23   : > { %622 = vmatpush3.bf16.msra.mxu0 %v699_v16 }
  0x24   : > { %623 = vmatprep.subr.bf16.mxu0 %v778_v3 }
  0x25   : > { %642 = vmatpush3.bf16.msra.mxu1 %v707_v24 }
  0x26   : > { %643 = vmatprep.subr.bf16.mxu1 %v778_v3 }
  0x27   : > { %624 = vmatpush3.bf16.msra.mxu0 %v700_v17 }
  0x28   : > { %625 = vmatprep.subr.bf16.mxu0 %v778_v3 }
  0x29   : > { %644 = vmatpush3.bf16.msra.mxu1 %v708_v36 }
  0x2a   : > { %645 = vmatprep.subr.bf16.mxu1 %v778_v3 }
  0x2b   : > { %626 = vmatpush3.bf16.msra.mxu0 %v701_v18 }
  0x2d   : > { %646 = vmatpush3.bf16.msra.mxu1 %v709_v37 }
  0xa6   : > { %v230_v5 = vpop.xlane.xlu0 %229 }
  0xa7   : > { %v234_v6 = vmul.f32 0.0078125, %v230_v5 }
  0xa9   : > { %v236_v7 = vsub.f32 %v865_v0, %v234_v6 }
  0xaa   : > { %v232_v8 = vpop.xlane.xlu0 %231 }
  0xab   : > { %v235_v9 = vmul.f32 0.0078125, %v232_v8  ;;  %v238_v10 = vmul.f32 %v236_v7, %v236_v7 }
  0xad   : > { %v237_v11 = vsub.f32 %v867_v1, %v235_v9  ;;  %240 = vadd.xlane.f32.xlu1 %v238_v10 }
  0xaf   : > { %v239_v12 = vmul.f32 %v237_v11, %v237_v11 }
  0xb1   : > { %242 = vadd.xlane.f32.xlu1 %v239_v12 }
 0x13a   : > { %v241_v25 = vpop.xlane.xlu1 %240 }
 0x13b   : > { %v244_v26 = vmul.f32 0.0078125, %v241_v25 }
 0x13d   : > { %v246_v27 = vadd.f32 1e-05, %v244_v26 }
 0x13e   : > { %v243_v28 = vpop.xlane.xlu1 %242 }
 0x13f   : > { %v245_v29 = vmul.f32 0.0078125, %v243_v28  ;;  %710 = vrsqrt.f32 %v246_v27 }
 0x141   : > { %v247_v30 = vadd.f32 1e-05, %v245_v29 }
 0x143   : > { %712 = vrsqrt.f32 %v247_v30 }
 0x149   : > { %v711_v31 = vpop.eup %710 }
 0x14a   : > { %v250_v33 = vmul.f32 %v711_v31, %v236_v7 }
 0x14d   : > { %v713_v32 = vpop.eup %712 }
 0x14e   : > { %v251_v34 = vmul.f32 %v713_v32, %v237_v11 }
 0x150   : > { %v252_v35 = vpack.c.bf16 %v251_v34, %v250_v33 }
 0x152   : > { %628 = vmatmul.mubr.bf16.vlgmr.msra.gmra.mrb[0].mxu0 %v252_v35 }
 0x225   : > { %v358_v39 = vpop.f32.mrb[0].mxu0 }
 0x226   : > { %v359_v40 = vadd.f32 %v569_v38, %v358_v39  ;;  %v629_v41 = vpop.f32.mrb[1].mxu0 }
 0x227   : > { %v361_v42 = vpop.f32.mrb[2].mxu0 }
 0x228   : > { %v362_v43 = vadd.f32 %v569_v38, %v361_v42  ;;  %v630_v44 = vpop.f32.mrb[3].mxu0  ;;  %v365_v45 = vmax.f32 %v359_v40, 0.0 }
 0x22a   : > { %v366_v46 = vmax.f32 %v362_v43, 0.0 }
 0x22c   : > { %v367_v47 = vpack.c.bf16 %v366_v46, %v365_v45 }
 0x22e   : > { %648 = vmatmul.mubr.bf16.vlgmr.msra.gmra.mrb[0].mxu1 %v367_v47 }
 0x301   : > { %v473_v49 = vpop.f32.mrb[0].mxu1 }
 0x302   : > { %v474_v50 = vadd.f32 %v578_v48, %v473_v49  ;;  %v649_v51 = vpop.f32.mrb[1].mxu1 }
 0x303   : > { %v476_v52 = vpop.f32.mrb[2].mxu1 }
 0x304   : > { %v480_v53 = vmax.f32 %v474_v50, 0.0  ;;  %v477_v54 = vadd.f32 %v578_v48, %v476_v52  ;;  %v650_v55 = vpop.f32.mrb[3].mxu1 }
 0x306   : > { %v482_v56 = vadd.f32 %v480_v53, %v865_v0  ;;  %v481_v57 = vmax.f32 %v477_v54, 0.0 }
 0x308   : > { %484 = vst [vmem:[%s218_s16] sm:$0xff] %v482_v56  ;;  %v483_v58 = vadd.f32 %v481_v57, %v867_v1 }
 0x30a   : > { %485 = vst [vmem:[%s218_s16 + $0x8] sm:$0xff] %v483_v58 }
 0x30b   : > { %727 = shalt.err (!%p724_p3)
}
 0x30c   : > { %s728_s10 = scalar_lea.hbm %s953_s30, 256  ;;  %s732_s13 = scalar_lea.hbm %s1002_s5, 1024 }
 0x30d   : > { %p729_p4 = scmp.ne.s32.totalorder %s953_s30, %s728_s10  ;;  %p733_p9 = scmp.lt.u32.totalorder %s953_s30, %s1002_s5 }
 0x30e   : > { %p734_p10 = scmp.lt.u32.totalorder %s732_s13, %s728_s10  ;;  %p736_p12 = scmp.lt.u32.totalorder %s728_s10, %s953_s30 }
 0x30f   : > { %p730_p7 = pnand %p729_p4, %p851_p5 }
 0x310   : > { %p735_p11 = por %p734_p10, %p733_p9 }
 0x311   : > { %p731_p8 = pneg %p730_p7 }
 0x312   : > { %p737_p13 = por %p736_p12, %p735_p11 }
 0x314   : > { %p738_p0 = pnand %p737_p13, %p731_p8 }
 0x316   : > { %741 = shalt.err (!%p738_p0)
}
 0x317   : > { %s781_s16 = smov 128   ;;  %s782_s23 = smov 8  }
 0x318   : > { %651 = dma.vmem_to_hbm [thread:$0]  (%p851_p5), %s948_s17, 256, %s953_s30, %s956_s6, %s781_s16, %s781_s16, %s782_s23  }
 0x319 PF: > { %p657_p1 = scmp.ge.s32.totalorder %s776_s21, 2  ;;  %s515_s25 = sand.u32 1, %s764_s18  }
 0x31a   : > { %s516_s26 = scalar_lea.sflag [#allocation3], %s515_s25 }
 0x31b   : > { %p654_p2 = pnand %p657_p1, %p855_p6 }
 0x31d   : > { %759 = dma.done.wait (!%p654_p2), %s516_s26, 256  }
 0x31e   : > { %761 = vsyncadd (!%p654_p2), %s516_s26, 4294967040  ;;  %p15_p3 = scmp.ge.s32.totalorder %s838_s24, 6   ;;  %s1005_s18 = smov %s768_s19 }
 0x31f   : > { %s1006_s19 = smov %s772_s20  ;;  %s1007_s20 = smov %s849_s27 }
 0x320   : > { %s1008_s21 = smov %s838_s24  ;;  %17 = sbr.rel (!%p15_p3) target bundleno = 3 (0x3), region = 75 }
 0x327   :  { %521 = vsyncpa [#allocation3], 1 }
 0x328   :  { %523 = vsyncpa [#allocation3 + $0x1], 1 }

// kernel: _residual_block_impl.1
= control target key start
LH: loop header
LB: loop body
LE: loop exit
PB: predicated region body
PF: predicated region fallthrough
CT: control target
= control target key end

     0   :  { %10 = vsyncpa [#allocation3], 0  ;;  %s997_s0 = inlined_call_operand.vmem [shape: f32[64,128], index: 0, kind: input, shape index: {}]   ;;  %s998_s1 = inlined_call_operand.vmem [shape: bf16[128,128], index: 1, kind: input, shape index: {}]   ;;  %s999_s2 = inlined_call_operand.vmem [shape: f32[1,128], index: 2, kind: input, shape index: {}]   ;;  %s1000_s3 = inlined_call_operand.vmem [shape: bf16[128,128], index: 3, kind: input, shape index: {}]   ;;  %s1001_s4 = inlined_call_operand.vmem [shape: f32[1,128], index: 4, kind: input, shape index: {}]   ;;  %s1002_s5 = inlined_call_operand.hbm [shape: f32[64,128], index: 5, kind: output, shape index: {}]  }
   0x1   :  { %12 = vsyncpa [#allocation3 + $0x1], 0  ;;  %s813_s18 = smov 0   ;;  %s815_s19 = smov 0  }
   0x2   :  { %s817_s20 = smov 0   ;;  %s819_s21 = smov 0  }
   0x3 LB: > { %s834_s22 = sadd.s32 4294967295, %s776_s21   ;;  %s562_s23 = sadd.s32 4294967294, %s776_s21   ;;  %s776_s21 = sphi %s819_s21, %s1008_s21   ;;  %s772_s20 = sphi %s817_s20, %s1007_s20   ;;  %s768_s19 = sphi %s815_s19, %s1006_s19   ;;  %s764_s18 = sphi %s813_s18, %s1005_s18  }
   0x4   : > { %s838_s24 = sadd.s32 1, %s776_s21   ;;  %s135_s25 = sadd.s32 1, %s772_s20 }
   0x5   : > { %s132_s26 = ssub.s32 %s776_s21, %s838_s24  ;;  %p145_p0 = scmp.ne.s32.totalorder %s772_s20, %s768_s19 }
   0x6   : > { %p133_p1 = scmp.eq.s32.totalorder %s132_s26, 0  ;;  %p146_p2 = scmp.eq.s32.totalorder %s834_s22, 3 }
   0x7   : > { %p151_p3 = scmp.ne.s32.totalorder %s768_s19, %s764_s18  ;;  %p152_p4 = scmp.eq.s32.totalorder %s562_s23, 3 }
   0x8   : > { %s849_s27 = scalar_select %p133_p1, %s772_s20, %s135_s25  }
   0x9   : > { %p851_p5 = por %p146_p2, %p145_p0  ;;  %p855_p6 = por %p152_p4, %p151_p3 }
   0xa   : > { %p565_p7 = scmp.ge.s32.totalorder %s776_s21, 1  ;;  %p191_p8 = scmp.lt.s32.totalorder %s776_s21, 5 }
   0xc   : > { %p192_p9 = pnand %p565_p7, %p191_p8 }
   0xd   : > { %s567_s30 = sshll.u32 (!%p192_p9), %s834_s22, 1  ;;  %v694_v2 = vld [vmem:[%s998_s1] sm:$0xff] (!%p192_p9)   ;;  %v778_v3 = vmov (!%p192_p9), 0.0   ;;  %v695_v4 = vld [vmem:[%s998_s1 + $0x8] sm:$0xff] (!%p192_p9)   ;;  %v696_v13 = vld [vmem:[%s998_s1 + $0x10] sm:$0xff] (!%p192_p9)   ;;  %vm779_vm0 = vmmov (!%p192_p9), 0  }
   0xe   : > { %195 = sbr.rel (%p192_p9) target bundleno = 793 (0x319), region = 40  ;;  %p220_p10 = scmp.lt.s32.totalorder (!%p192_p9), %s567_s30, 7  ;;  %611 = vmatprep.subr.bf16.mxu0 (!%p192_p9), %v778_v3  ;;  %631 = vmatprep.subr.bf16.mxu1 (!%p192_p9), %v778_v3  ;;  %v697_v14 = vld [vmem:[%s998_s1 + $0x18] sm:$0xff] (!%p192_p9)   ;;  %v698_v15 = vld [vmem:[%s998_s1 + $0x20] sm:$0xff] (!%p192_p9)   ;;  %v699_v16 = vld [vmem:[%s998_s1 + $0x28] sm:$0xff] (!%p192_p9)  }
   0xf   : > { %612 = vmatpush3.bf16.msra.mxu0 (!%p192_p9), %v694_v2  ;;  %627 = vmatprep.mubr.msk.bf16.mxu0 (!%p192_p9), %vm779_vm0, %v778_v3  ;;  %v700_v17 = vld [vmem:[%s998_s1 + $0x30] sm:$0xff] (!%p192_p9)   ;;  %v701_v18 = vld [vmem:[%s998_s1 + $0x38] sm:$0xff] (!%p192_p9)   ;;  %v702_v19 = vld [vmem:[%s1000_s3] sm:$0xff] (!%p192_p9)   ;;  %s216_s12 = sand.u32 (!%p192_p9), 1, %s768_s19   ;;  %s592_s23 = sshll.u32 (!%p192_p9), %s834_s22, 8 }
  0x10   : > { %613 = vmatprep.subr.bf16.mxu0 (!%p192_p9), %v778_v3  ;;  %647 = vmatprep.mubr.msk.bf16.mxu1 (!%p192_p9), %vm779_vm0, %v778_v3  ;;  %v703_v20 = vld [vmem:[%s1000_s3 + $0x8] sm:$0xff] (!%p192_p9)   ;;  %v704_v21 = vld [vmem:[%s1000_s3 + $0x10] sm:$0xff] (!%p192_p9)   ;;  %v705_v22 = vld [vmem:[%s1000_s3 + $0x18] sm:$0xff] (!%p192_p9)   ;;  %s566_s13 = sshll.u32 (!%p192_p9), %s216_s12, 4  ;;  %s780_s7 = smov (!%p192_p9), [#allocation2]  }
  0x11   : > { %632 = vmatpush3.bf16.msra.mxu1 (!%p192_p9), %v702_v19  ;;  %v706_v23 = vld [vmem:[%s1000_s3 + $0x20] sm:$0xff] (!%p192_p9)   ;;  %v707_v24 = vld [vmem:[%s1000_s3 + $0x28] sm:$0xff] (!%p192_p9)   ;;  %v708_v36 = vld [vmem:[%s1000_s3 + $0x30] sm:$0xff] (!%p192_p9)   ;;  %s218_s16 = scalar_lea.vmem (!%p192_p9), [#allocation2], %s566_s13  ;;  %s718_s8 = sshll.u32 (!%p192_p9), %s780_s7, 4  ;;  %s719_s8 = int_to_ptr.vmem [resolvable:$false] %s718_s8 }
  0x12   : > { %633 = vmatprep.subr.bf16.mxu1 (!%p192_p9), %v778_v3  ;;  %v709_v37 = vld [vmem:[%s1000_s3 + $0x38] sm:$0xff] (!%p192_p9)   ;;  %v569_v38 = vld [vmem:[%s999_s2] ss:$0 sm:$0xff] (!%p192_p9)  ;;  %s500_s17 = sshll.u32 (!%p192_p9), %s218_s16, 4  ;;  %s948_s17 = int_to_ptr.vmem [resolvable:$true] %s500_s17 }
  0x13   : > { %614 = vmatpush3.bf16.msra.mxu0 (!%p192_p9), %v695_v4  ;;  %v578_v48 = vld [vmem:[%s1001_s4] ss:$0 sm:$0xff] (!%p192_p9)  ;;  %s714_s22 = scalar_lea.vmem (!%p192_p9), %s948_s17, 256  ;;  %p721_p0 = scmp.lt.s32.totalorder (!%p192_p9), %s948_s17, %s719_s8 }
  0x14   : > { %615 = vmatprep.subr.bf16.mxu0 (!%p192_p9), %v778_v3  ;;  %p715_p11 = scmp.ne.s32.totalorder (!%p192_p9), %s948_s17, %s714_s22 }
  0x15   : > { %s1010_s30 = smov (!%p220_p10, %s567_s30), 7  ;;  %634 = vmatpush3.bf16.msra.mxu1 %v703_v20 }
  0x16   : > { %s568_s6 = sshll.u32 %s1010_s30, 3  ;;  %635 = vmatprep.subr.bf16.mxu1 %v778_v3  ;;  %s953_s30 = scalar_lea.hbm %s1002_s5, %s592_s23 }
  0x17   : > { %s223_s9 = scalar_lea.vmem %s997_s0, %s568_s6  ;;  %616 = vmatpush3.bf16.msra.mxu0 %v696_v13  ;;  %s956_s6 = scalar_lea.sflag [#allocation3], %s216_s12 }
  0x18   : > { %v865_v0 = vld [vmem:[%s223_s9] sm:$0xff]  ;;  %v867_v1 = vld [vmem:[%s223_s9 + $0x8] sm:$0xff]  ;;  %617 = vmatprep.subr.bf16.mxu0 %v778_v3  ;;  %p716_p12 = pnand %p715_p11, %p851_p5  ;;  %s720_s9 = scalar_lea.vmem %s719_s8, 512 }
  0x19   : > { %229 = vadd.xlane.f32.xlu0 %v865_v0  ;;  %636 = vmatpush3.bf16.msra.mxu1 %v704_v21  ;;  %p722_p1 = scmp.lt.s32.totalorder %s720_s9, %s714_s22 }
  0x1a   : > { %637 = vmatprep.subr.bf16.mxu1 %v778_v3  ;;  %p717_p13 = pneg %p716_p12 }
  0x1b   : > { %618 = vmatpush3.bf16.msra.mxu0 %v697_v14  ;;  %p723_p2 = por %p722_p1, %p721_p0 }
  0x1c   : > { %619 = vmatprep.subr.bf16.mxu0 %v778_v3 }
  0x1d   : > { %231 = vadd.xlane.f32.xlu0 %v867_v1  ;;  %638 = vmatpush3.bf16.msra.mxu1 %v705_v22  ;;  %p724_p3 = pnand %p723_p2, %p717_p13 }
  0x1e   : > { %639 = vmatprep.subr.bf16.mxu1 %v778_v3 }
  0x1f   : > { %620 = vmatpush3.bf16.msra.mxu0 %v698_v15 }
  0x20   : > { %621 = vmatprep.subr.bf16.mxu0 %v778_v3 }
  0x21   : > { %640 = vmatpush3.bf16.msra.mxu1 %v706_v23 }
  0x22   : > { %641 = vmatprep.subr.bf16.mxu1 %v778_v3 }
  0x23   : > { %622 = vmatpush3.bf16.msra.mxu0 %v699_v16 }
  0x24   : > { %623 = vmatprep.subr.bf16.mxu0 %v778_v3 }
  0x25   : > { %642 = vmatpush3.bf16.msra.mxu1 %v707_v24 }
  0x26   : > { %643 = vmatprep.subr.bf16.mxu1 %v778_v3 }
  0x27   : > { %624 = vmatpush3.bf16.msra.mxu0 %v700_v17 }
  0x28   : > { %625 = vmatprep.subr.bf16.mxu0 %v778_v3 }
  0x29   : > { %644 = vmatpush3.bf16.msra.mxu1 %v708_v36 }
  0x2a   : > { %645 = vmatprep.subr.bf16.mxu1 %v778_v3 }
  0x2b   : > { %626 = vmatpush3.bf16.msra.mxu0 %v701_v18 }
  0x2d   : > { %646 = vmatpush3.bf16.msra.mxu1 %v709_v37 }
  0xa6   : > { %v230_v5 = vpop.xlane.xlu0 %229 }
  0xa7   : > { %v234_v6 = vmul.f32 0.0078125, %v230_v5 }
  0xa9   : > { %v236_v7 = vsub.f32 %v865_v0, %v234_v6 }
  0xaa   : > { %v232_v8 = vpop.xlane.xlu0 %231 }
  0xab   : > { %v235_v9 = vmul.f32 0.0078125, %v232_v8  ;;  %v238_v10 = vmul.f32 %v236_v7, %v236_v7 }
  0xad   : > { %v237_v11 = vsub.f32 %v867_v1, %v235_v9  ;;  %240 = vadd.xlane.f32.xlu1 %v238_v10 }
  0xaf   : > { %v239_v12 = vmul.f32 %v237_v11, %v237_v11 }
  0xb1   : > { %242 = vadd.xlane.f32.xlu1 %v239_v12 }
 0x13a   : > { %v241_v25 = vpop.xlane.xlu1 %240 }
 0x13b   : > { %v244_v26 = vmul.f32 0.0078125, %v241_v25 }
 0x13d   : > { %v246_v27 = vadd.f32 1e-05, %v244_v26 }
 0x13e   : > { %v243_v28 = vpop.xlane.xlu1 %242 }
 0x13f   : > { %v245_v29 = vmul.f32 0.0078125, %v243_v28  ;;  %710 = vrsqrt.f32 %v246_v27 }
 0x141   : > { %v247_v30 = vadd.f32 1e-05, %v245_v29 }
 0x143   : > { %712 = vrsqrt.f32 %v247_v30 }
 0x149   : > { %v711_v31 = vpop.eup %710 }
 0x14a   : > { %v250_v33 = vmul.f32 %v711_v31, %v236_v7 }
 0x14d   : > { %v713_v32 = vpop.eup %712 }
 0x14e   : > { %v251_v34 = vmul.f32 %v713_v32, %v237_v11 }
 0x150   : > { %v252_v35 = vpack.c.bf16 %v251_v34, %v250_v33 }
 0x152   : > { %628 = vmatmul.mubr.bf16.vlgmr.msra.gmra.mrb[0].mxu0 %v252_v35 }
 0x225   : > { %v358_v39 = vpop.f32.mrb[0].mxu0 }
 0x226   : > { %v359_v40 = vadd.f32 %v569_v38, %v358_v39  ;;  %v629_v41 = vpop.f32.mrb[1].mxu0 }
 0x227   : > { %v361_v42 = vpop.f32.mrb[2].mxu0 }
 0x228   : > { %v362_v43 = vadd.f32 %v569_v38, %v361_v42  ;;  %v630_v44 = vpop.f32.mrb[3].mxu0  ;;  %v365_v45 = vmax.f32 %v359_v40, 0.0 }
 0x22a   : > { %v366_v46 = vmax.f32 %v362_v43, 0.0 }
 0x22c   : > { %v367_v47 = vpack.c.bf16 %v366_v46, %v365_v45 }
 0x22e   : > { %648 = vmatmul.mubr.bf16.vlgmr.msra.gmra.mrb[0].mxu1 %v367_v47 }
 0x301   : > { %v473_v49 = vpop.f32.mrb[0].mxu1 }
 0x302   : > { %v474_v50 = vadd.f32 %v578_v48, %v473_v49  ;;  %v649_v51 = vpop.f32.mrb[1].mxu1 }
 0x303   : > { %v476_v52 = vpop.f32.mrb[2].mxu1 }
 0x304   : > { %v480_v53 = vmax.f32 %v474_v50, 0.0  ;;  %v477_v54 = vadd.f32 %v578_v48, %v476_v52  ;;  %v650_v55 = vpop.f32.mrb[3].mxu1 }
 0x306   : > { %v482_v56 = vadd.f32 %v480_v53, %v865_v0  ;;  %v481_v57 = vmax.f32 %v477_v54, 0.0 }
 0x308   : > { %484 = vst [vmem:[%s218_s16] sm:$0xff] %v482_v56  ;;  %v483_v58 = vadd.f32 %v481_v57, %v867_v1 }
 0x30a   : > { %485 = vst [vmem:[%s218_s16 + $0x8] sm:$0xff] %v483_v58 }
 0x30b   : > { %727 = shalt.err (!%p724_p3)
}
 0x30c   : > { %s728_s10 = scalar_lea.hbm %s953_s30, 256  ;;  %s732_s13 = scalar_lea.hbm %s1002_s5, 1024 }
 0x30d   : > { %p729_p4 = scmp.ne.s32.totalorder %s953_s30, %s728_s10  ;;  %p733_p9 = scmp.lt.u32.totalorder %s953_s30, %s1002_s5 }
 0x30e   : > { %p734_p10 = scmp.lt.u32.totalorder %s732_s13, %s728_s10  ;;  %p736_p12 = scmp.lt.u32.totalorder %s728_s10, %s953_s30 }
 0x30f   : > { %p730_p7 = pnand %p729_p4, %p851_p5 }
 0x310   : > { %p735_p11 = por %p734_p10, %p733_p9 }
 0x311   : > { %p731_p8 = pneg %p730_p7 }
 0x312   : > { %p737_p13 = por %p736_p12, %p735_p11 }
 0x314   : > { %p738_p0 = pnand %p737_p13, %p731_p8 }
 0x316   : > { %741 = shalt.err (!%p738_p0)
}
 0x317   : > { %s781_s16 = smov 128   ;;  %s782_s23 = smov 8  }
 0x318   : > { %651 = dma.vmem_to_hbm [thread:$0]  (%p851_p5), %s948_s17, 256, %s953_s30, %s956_s6, %s781_s16, %s781_s16, %s782_s23  }
 0x319 PF: > { %p657_p1 = scmp.ge.s32.totalorder %s776_s21, 2  ;;  %s515_s25 = sand.u32 1, %s764_s18  }
 0x31a   : > { %s516_s26 = scalar_lea.sflag [#allocation3], %s515_s25 }
 0x31b   : > { %p654_p2 = pnand %p657_p1, %p855_p6 }
 0x31d   : > { %759 = dma.done.wait (!%p654_p2), %s516_s26, 256  }
 0x31e   : > { %761 = vsyncadd (!%p654_p2), %s516_s26, 4294967040  ;;  %p15_p3 = scmp.ge.s32.totalorder %s838_s24, 6   ;;  %s1005_s18 = smov %s768_s19 }
 0x31f   : > { %s1006_s19 = smov %s772_s20  ;;  %s1007_s20 = smov %s849_s27 }
 0x320   : > { %s1008_s21 = smov %s838_s24  ;;  %17 = sbr.rel (!%p15_p3) target bundleno = 3 (0x3), region = 75 }
 0x327   :  { %521 = vsyncpa [#allocation3], 1 }
 0x328   :  { %523 = vsyncpa [#allocation3 + $0x1], 1 }

</bundles_post_ra>
